<compile_context>
chip_gen: v7x
topology: tpu7x:2x2x1
jax: 0.10.0
libtpu: 0.0.40
codegen_flags: <defaults>
</compile_context>

<pallas_src>
import functools

import jax
import jax.numpy as jnp
from jax.experimental import pallas as pl
from jax.experimental.pallas import tpu as pltpu

IN_DIM = 11
HIDDEN = 128          # 64 * 2
OUT_DIM = 1
BLOCK_B = 8192        # batch tile target; multiple of 16


def _round_up(n, m):
    return ((n + m - 1) // m) * m


def _detect_eup_dtype():
    # bf16 bias-add/tanh only where the VPU/EUP support bf16 (v6e / v7x).
    try:
        kind = jax.devices()[0].device_kind.lower()
    except Exception:
        return jnp.float32
    if ("v6" in kind) or ("v7" in kind) or ("trillium" in kind):
        return jnp.bfloat16
    return jnp.float32


_EUP_DTYPE = _detect_eup_dtype()


def meta_loss_kernel(x_ref, w1_ref, b1_ref, w2_ref, b2_ref, w3r_ref, o_ref,
                     *, block_b, valid_last, num_blocks, eup_dtype):
    # Layer 1: (TB, 11) @ (11, 128); bf16 MXU operands, f32 accumulate.
    h1 = jnp.dot(x_ref[...].astype(jnp.bfloat16), w1_ref[...],
                 preferred_element_type=jnp.float32)
    a1 = jnp.tanh(h1.astype(eup_dtype) + b1_ref[...])          # (TB, 128)

    # Layer 2: 0.01 (h1 scale) pre-folded into w2_ref (bf16); f32 accumulate.
    h2 = jnp.dot(a1.astype(jnp.bfloat16), w2_ref[...],
                 preferred_element_type=jnp.float32)
    a2 = jnp.tanh(h2.astype(eup_dtype) + b2_ref[...]).astype(jnp.float32)

    # Layer 3 (128 -> 1): reduce rows FIRST (tile-aligned sublane reshape),
    # then a single (8,128) multiply by the scaled w3 row.  0.01 (h2 scale)
    # and 0.1 (loss scale) are folded into w3r_ref; 1/B + 0.1*b3 happen in
    # the wrapper finalize.
    def write(vals):
        o_ref[...] = (jnp.sum(vals.reshape(block_b // 8, 8, HIDDEN), axis=0)
                      * w3r_ref[...])

    def masked_a2():
        # Padded rows are non-zero after biases (tanh(b1) ...), so they must
        # be zeroed before the reduction to keep the true-B mean exact.
        row = jax.lax.broadcasted_iota(jnp.int32, a2.shape, 0)
        return jnp.where(row < valid_last, a2, 0.0)

    if valid_last is None:            # batch was an exact tile multiple
        write(a2)
    elif num_blocks == 1:             # single (padded) block: always mask
        write(masked_a2())
    else:                             # mask only in the last grid block
        last = pl.program_id(0) == num_blocks - 1

        @pl.when(jnp.logical_not(last))
        def _():
            write(a2)

        @pl.when(last)
        def _():
            write(masked_a2())


@jax.jit
def meta_loss_forward(x, w1, b1, w2, b2, w3, b3):
    B = x.shape[0]
    # Big tiles to amortize per-step overhead, but keep >= 2 blocks for
    # mid-size batches so the "parallel" axis shards across v7x's two TCs.
    block_b = min(BLOCK_B, _round_up(max(-(-B // 2), 8), 16))
    num_blocks = pl.cdiv(B, block_b)
    b_pad = num_blocks * block_b
    masked = b_pad != B
    if masked:
        x = jnp.pad(x, ((0, b_pad - B), (0, 0)))
    valid_last = (B - (num_blocks - 1) * block_b) if masked else None

    # Host-side folding / casts (done once; weights stay VMEM-resident).
    w1_b = w1.astype(jnp.bfloat16)
    b1_c = b1.astype(_EUP_DTYPE)
    w2_b = (w2 * 0.01).astype(jnp.bfloat16)            # fold h1 scale
    b2_c = b2.astype(_EUP_DTYPE)
    w3_row = (w3.reshape(1, HIDDEN) * (0.01 * 0.1)).astype(jnp.float32)

    full = lambda shape: pl.BlockSpec(shape, lambda i: (0,) * len(shape))

    eup_bytes = jnp.dtype(_EUP_DTYPE).itemsize
    weight_bytes = (IN_DIM * HIDDEN * 2 + HIDDEN * HIDDEN * 2
                    + 2 * HIDDEN * eup_bytes + HIDDEN * 4)
    cost = pl.CostEstimate(
        flops=2 * b_pad * (IN_DIM + HIDDEN + 1) * HIDDEN,
        transcendentals=2 * b_pad * HIDDEN,
        bytes_accessed=b_pad * IN_DIM * 4 + weight_bytes
        + num_blocks * 8 * HIDDEN * 4,
    )

    partials = pl.pallas_call(
        functools.partial(meta_loss_kernel, block_b=block_b,
                          valid_last=valid_last, num_blocks=num_blocks,
                          eup_dtype=_EUP_DTYPE),
        out_shape=jax.ShapeDtypeStruct((8, num_blocks * HIDDEN), jnp.float32),
        grid=(num_blocks,),
        in_specs=[
            pl.BlockSpec((block_b, IN_DIM), lambda i: (i, 0)),  # x: streamed
            full((IN_DIM, HIDDEN)),                             # w1 (bf16)
            full((1, HIDDEN)),                                  # b1
            full((HIDDEN, HIDDEN)),                             # 0.01*w2 (bf16)
            full((1, HIDDEN)),                                  # b2
            full((1, HIDDEN)),                                  # 0.001*w3 row
        ],
        out_specs=pl.BlockSpec((8, HIDDEN), lambda i: (0, i)),
        compiler_params=pltpu.CompilerParams(
            dimension_semantics=("parallel",),
            vmem_limit_bytes=48 * 1024 * 1024),
        cost_estimate=cost,
    )(x, w1_b, b1_c, w2_b, b2_c, w3_row)

    # Finalize: sum per-block partials, apply 1/B (mean) and the output bias.
    return jnp.sum(partials) / B + 0.1 * b3[0, 0]


def xavier_normal(key, fan_in, fan_out):
    # torch.nn.init.xavier_normal_: std = sqrt(2 / (fan_in + fan_out)).
    # Stored as [in, out] so the kernel computes x @ W + b (== x @ W.T in torch).
    std = (2.0 / (fan_in + fan_out)) ** 0.5
    return jax.random.normal(key, (fan_in, fan_out), dtype=jnp.float32) * std


def init_params(key):
    k1, k2, k3 = jax.random.split(key, 3)
    w1 = xavier_normal(k1, IN_DIM, HIDDEN)
    b1 = jnp.zeros((1, HIDDEN), dtype=jnp.float32)
    w2 = xavier_normal(k2, HIDDEN, HIDDEN)
    b2 = jnp.zeros((1, HIDDEN), dtype=jnp.float32)
    w3 = xavier_normal(k3, HIDDEN, OUT_DIM)
    b3 = jnp.zeros((1, OUT_DIM), dtype=jnp.float32)
    return w1, b1, w2, b2, w3, b3


def reference_forward_f32(x, w1, b1, w2, b2, w3, b3):
    # Direct transcription of the PyTorch module (f32).
    h1 = jnp.tanh(x @ w1 + b1) * 0.01
    h2 = jnp.tanh(h1 @ w2 + b2) * 0.01
    return jnp.mean(h2 @ w3 + b3) * 0.1


def reference_forward_matched(x, w1, b1, w2, b2, w3, b3):
    # Same math with the kernel's precision policy (bf16 MXU operands for both
    # matmuls, f32 accumulate, eup-dtype bias-add/tanh) for a tight check.
    B = x.shape[0]
    h1 = jnp.dot(x.astype(jnp.bfloat16), w1.astype(jnp.bfloat16),
                 preferred_element_type=jnp.float32)
    a1 = jnp.tanh(h1.astype(_EUP_DTYPE) + b1.astype(_EUP_DTYPE))
    w2_b = (w2 * 0.01).astype(jnp.bfloat16)
    h2 = jnp.dot(a1.astype(jnp.bfloat16), w2_b,
                 preferred_element_type=jnp.float32)
    a2 = jnp.tanh(h2.astype(_EUP_DTYPE) + b2.astype(_EUP_DTYPE)).astype(jnp.float32)
    w3_row = w3.reshape(1, HIDDEN) * (0.01 * 0.1)
    return jnp.sum(a2 * w3_row) / B + 0.1 * b3[0, 0]


if __name__ == "__main__":
    key = jax.random.PRNGKey(0)
    k_x, k_p = jax.random.split(key)
    params = init_params(k_p)

    # Small batch (single padded block; in-kernel mask keeps the mean exact).
    B = 8
    x = jax.random.normal(k_x, (B, IN_DIM), dtype=jnp.float32)
    y = jax.block_until_ready(meta_loss_forward(x, *params))

    y_matched = reference_forward_matched(x, *params)
    assert jnp.allclose(y, y_matched, atol=1e-6, rtol=1e-3), (y, y_matched)

    y_f32 = reference_forward_f32(x, *params)
    assert jnp.allclose(y, y_f32, atol=5e-6, rtol=1e-1), (y, y_f32)

    # Moderate batch: exercises the multi-block path and the
    # last-block-only padding mask.
    B2 = 2500
    x2 = jax.random.normal(k_x, (B2, IN_DIM), dtype=jnp.float32)
    y2 = jax.block_until_ready(meta_loss_forward(x2, *params))
    y2_matched = reference_forward_matched(x2, *params)
    assert jnp.allclose(y2, y2_matched, atol=1e-6, rtol=1e-3), (y2, y2_matched)

    print("KERNEL_OK")
</pallas_src>

<mosaic_0001>
module attributes {stable_mosaic.version = 11 : i64} {
  func.func @meta_loss_kernel(%arg0: i32, %arg1: memref<16x11xf32, #tpu.memory_space<vmem>>, %arg2: memref<11x128xbf16, #tpu.memory_space<vmem>>, %arg3: memref<1x128xf32, #tpu.memory_space<vmem>>, %arg4: memref<128x128xbf16, #tpu.memory_space<vmem>>, %arg5: memref<1x128xf32, #tpu.memory_space<vmem>>, %arg6: memref<1x128xf32, #tpu.memory_space<vmem>>, %arg7: memref<8x128xf32, #tpu.memory_space<vmem>>) attributes {dimension_semantics = [#tpu.dimension_semantics<parallel>], iteration_bounds = array<i64: 1>, scalar_prefetch = 0 : i64, scratch_operands = 0 : i64, tpu.core_type = #tpu.core_type<tc>, window_params = [{transform_indices = @transform_0, window_bounds = array<i64: 16, 11>}, {pipeline_mode = #tpu.pipeline_mode<synchronous>, transform_indices = @transform_1, window_bounds = array<i64: 11, 128>}, {pipeline_mode = #tpu.pipeline_mode<synchronous>, transform_indices = @transform_2, window_bounds = array<i64: 1, 128>}, {pipeline_mode = #tpu.pipeline_mode<synchronous>, transform_indices = @transform_3, window_bounds = array<i64: 128, 128>}, {pipeline_mode = #tpu.pipeline_mode<synchronous>, transform_indices = @transform_4, window_bounds = array<i64: 1, 128>}, {pipeline_mode = #tpu.pipeline_mode<synchronous>, transform_indices = @transform_5, window_bounds = array<i64: 1, 128>}, {transform_indices = @transform_6, window_bounds = array<i64: 8, 128>}]} {
    %c0 = arith.constant 0 : index
    %c0_0 = arith.constant 0 : index
    %0 = vector.load %arg1[%c0, %c0_0] : memref<16x11xf32, #tpu.memory_space<vmem>>, vector<16x11xf32>
    %1 = arith.truncf %0 : vector<16x11xf32> to vector<16x11xbf16>
    %c0_1 = arith.constant 0 : index
    %c0_2 = arith.constant 0 : index
    %2 = vector.load %arg2[%c0_1, %c0_2] : memref<11x128xbf16, #tpu.memory_space<vmem>>, vector<11x128xbf16>
    %cst = arith.constant dense<0.000000e+00> : vector<16x128xf32>
    %3 = tpu.matmul %1, %2, %cst {dimension_numbers = #tpu.dot_dimension_numbers<[1], [0], [0], [1], [0, 0, 1, 1], [], []>} : vector<16x11xbf16>, vector<11x128xbf16>, vector<16x128xf32> -> vector<16x128xf32>
    %c0_3 = arith.constant 0 : index
    %c0_4 = arith.constant 0 : index
    %4 = vector.load %arg3[%c0_3, %c0_4] : memref<1x128xf32, #tpu.memory_space<vmem>>, vector<1x128xf32>
    %5 = vector.broadcast %4 : vector<1x128xf32> to vector<16x128xf32>
    %6 = arith.addf %3, %5 : vector<16x128xf32>
    %7 = math.tanh %6 : vector<16x128xf32>
    %8 = arith.truncf %7 : vector<16x128xf32> to vector<16x128xbf16>
    %c0_5 = arith.constant 0 : index
    %c0_6 = arith.constant 0 : index
    %9 = vector.load %arg4[%c0_5, %c0_6] : memref<128x128xbf16, #tpu.memory_space<vmem>>, vector<128x128xbf16>
    %cst_7 = arith.constant dense<0.000000e+00> : vector<16x128xf32>
    %10 = tpu.matmul %8, %9, %cst_7 {dimension_numbers = #tpu.dot_dimension_numbers<[1], [0], [0], [1], [0, 0, 1, 1], [], []>} : vector<16x128xbf16>, vector<128x128xbf16>, vector<16x128xf32> -> vector<16x128xf32>
    %c0_8 = arith.constant 0 : index
    %c0_9 = arith.constant 0 : index
    %11 = vector.load %arg5[%c0_8, %c0_9] : memref<1x128xf32, #tpu.memory_space<vmem>>, vector<1x128xf32>
    %12 = vector.broadcast %11 : vector<1x128xf32> to vector<16x128xf32>
    %13 = arith.addf %10, %12 : vector<16x128xf32>
    %14 = math.tanh %13 : vector<16x128xf32>
    %15 = tpu.iota {dimensions = array<i32: 0>} : vector<16x128xi32>
    %c8_i32 = arith.constant 8 : i32
    %16 = vector.broadcast %c8_i32 : i32 to vector<16x128xi32>
    %17 = arith.cmpi slt, %15, %16 : vector<16x128xi32>
    %cst_10 = arith.constant 0.000000e+00 : f32
    %18 = vector.broadcast %cst_10 : f32 to vector<16x128xf32>
    %19 = arith.select %17, %14, %18 : vector<16x128xi1>, vector<16x128xf32>
    %20 = vector.shape_cast %19 : vector<16x128xf32> to vector<2x8x128xf32>
    %cst_11 = arith.constant dense<0.000000e+00> : vector<8x128xf32>
    %21 = vector.multi_reduction <add>, %20, %cst_11 [0] : vector<2x8x128xf32> to vector<8x128xf32>
    %c0_12 = arith.constant 0 : index
    %c0_13 = arith.constant 0 : index
    %22 = vector.load %arg6[%c0_12, %c0_13] : memref<1x128xf32, #tpu.memory_space<vmem>>, vector<1x128xf32>
    %23 = vector.broadcast %22 : vector<1x128xf32> to vector<8x128xf32>
    %24 = arith.mulf %21, %23 : vector<8x128xf32>
    %c0_14 = arith.constant 0 : index
    %c0_15 = arith.constant 0 : index
    %25 = vector.load %arg7[%c0_14, %c0_15] : memref<8x128xf32, #tpu.memory_space<vmem>>, vector<8x128xf32>
    tpu.vector_store %arg7[%c0_14, %c0_15], %24 {strides = array<i32>} : memref<8x128xf32, #tpu.memory_space<vmem>>, vector<8x128xf32>,
    return
  }
  func.func @transform_0(%arg0: i32) -> (i32, i32) {
    %c0_i32 = arith.constant 0 : i32
    %c0_i32_0 = arith.constant 0 : i32
    return %arg0, %c0_i32 : i32, i32
  }
  func.func @transform_1(%arg0: i32) -> (i32, i32) {
    %c0_i32 = arith.constant 0 : i32
    %c0_i32_0 = arith.constant 0 : i32
    %c0_i32_1 = arith.constant 0 : i32
    return %c0_i32, %c0_i32_0 : i32, i32
  }
  func.func @transform_2(%arg0: i32) -> (i32, i32) {
    %c0_i32 = arith.constant 0 : i32
    %c0_i32_0 = arith.constant 0 : i32
    %c0_i32_1 = arith.constant 0 : i32
    return %c0_i32, %c0_i32_0 : i32, i32
  }
  func.func @transform_3(%arg0: i32) -> (i32, i32) {
    %c0_i32 = arith.constant 0 : i32
    %c0_i32_0 = arith.constant 0 : i32
    %c0_i32_1 = arith.constant 0 : i32
    return %c0_i32, %c0_i32_0 : i32, i32
  }
  func.func @transform_4(%arg0: i32) -> (i32, i32) {
    %c0_i32 = arith.constant 0 : i32
    %c0_i32_0 = arith.constant 0 : i32
    %c0_i32_1 = arith.constant 0 : i32
    return %c0_i32, %c0_i32_0 : i32, i32
  }
  func.func @transform_5(%arg0: i32) -> (i32, i32) {
    %c0_i32 = arith.constant 0 : i32
    %c0_i32_0 = arith.constant 0 : i32
    %c0_i32_1 = arith.constant 0 : i32
    return %c0_i32, %c0_i32_0 : i32, i32
  }
  func.func @transform_6(%arg0: i32) -> (i32, i32) {
    %c0_i32 = arith.constant 0 : i32
    %c0_i32_0 = arith.constant 0 : i32
    return %c0_i32, %arg0 : i32, i32
  }
}

</mosaic_0001>

<bundles_post_ra>
// kernel: meta_loss_forward.1
= control target key start
LH: loop header
LB: loop body
LE: loop exit
PB: predicated region body
PF: predicated region fallthrough
CT: control target
= control target key end

     0   :  { %vm45_vm0 = vcmask 1044480   ;;  %vm46_vm1 = vcmask 1045504   ;;  %v299_v0 = vmov 0.0   ;;  %v300_v2 = vmov 65535   ;;  %s382_s1 = inlined_call_operand.vmem [shape: bf16[11,128], index: 1, kind: input, shape index: {}]   ;;  %s383_s0 = inlined_call_operand.vmem [shape: f32[16,11], index: 0, kind: input, shape index: {}]   ;;  %s384_s3 = inlined_call_operand.vmem [shape: bf16[128,128], index: 3, kind: input, shape index: {}]   ;;  %s385_s2 = inlined_call_operand.vmem [shape: f32[1,128], index: 2, kind: input, shape index: {}]   ;;  %s386_s4 = inlined_call_operand.vmem [shape: f32[1,128], index: 4, kind: input, shape index: {}]   ;;  %s387_s5 = inlined_call_operand.vmem [shape: f32[1,128], index: 5, kind: input, shape index: {}]   ;;  %s388_s6 = inlined_call_operand.vmem [shape: f32[8,128], index: 6, kind: output, shape index: {}]  }
   0x1   :  { %255 = vmatprep.subr.bf16.mxu0 %v299_v0  ;;  %v284_v1 = vld [vmem:[%s382_s1] sm:$0x3f]   ;;  %261 = vmatprep.subr.bf16.mxu1 %v299_v0  ;;  %v47_v3 = vsel %vm45_vm0, 4294967295, %v300_v2  ;;  %v25_v5 = vld [vmem:[%s383_s0 + $0x8] sm:$0xff]  ;;  %vm301_vm2 = vmmov 0   ;;  %vm41_vm3 = vcmask 89088  }
   0x2   :  { %v24_v4 = vld [vmem:[%s383_s0] sm:$0xff]  ;;  %v48_v7 = vsel %vm46_vm1, %v47_v3, 0  ;;  %257 = vmatprep.mubr.msk.bf16.mxu0 %vm301_vm2, %v299_v0  ;;  %v286_v8 = vld [vmem:[%s384_s3 + $0x8] sm:$0xff]   ;;  %277 = vmatprep.mubr.msk.bf16.mxu1 %vm301_vm2, %v299_v0  ;;  %v287_v11 = vld [vmem:[%s384_s3 + $0x10] sm:$0xff]  }
   0x3   :  { %v285_v6 = vld [vmem:[%s384_s3] sm:$0xff]   ;;  %v50_v9 = vand.u32 %v284_v1, %v48_v7  ;;  %v26_v10 = vpack.c.bf16 %v25_v5, %v24_v4  ;;  %v288_v12 = vld [vmem:[%s384_s3 + $0x18] sm:$0xff]   ;;  %v290_v14 = vld [vmem:[%s384_s3 + $0x28] sm:$0xff]  }
   0x4   :  { %262 = vmatpush3.bf16.msra.mxu1 %v285_v6  ;;  %v289_v13 = vld [vmem:[%s384_s3 + $0x20] sm:$0xff]   ;;  %v291_v15 = vld [vmem:[%s384_s3 + $0x30] sm:$0xff]   ;;  %v292_v16 = vld [vmem:[%s384_s3 + $0x38] sm:$0xff]  }
   0x5   :  { %263 = vmatprep.subr.bf16.mxu1 %v299_v0  ;;  %256 = vmatpush3.bf16.msra.mxu0 %v50_v9  ;;  %v231_v17 = vld [vmem:[%s385_s2] ss:$0 sm:$0xff] }
   0x6   :  { %v234_v27 = vld [vmem:[%s386_s4] ss:$0 sm:$0xff] }
   0x7   :  { %v243_v33 = vld [vmem:[%s387_s5] ss:$0 sm:$0xff] }
   0x8   :  { %264 = vmatpush3.bf16.msra.mxu1 %v286_v8  ;;  %258 = vmatmul.mubr.msk.bf16.vlgmr.msra.gmra.mrb[0].mxu0 %vm41_vm3, %v26_v10 }
   0x9   :  { %265 = vmatprep.subr.bf16.mxu1 %v299_v0 }
   0xc   :  { %266 = vmatpush3.bf16.msra.mxu1 %v287_v11 }
   0xd   :  { %267 = vmatprep.subr.bf16.mxu1 %v299_v0 }
  0x10   :  { %268 = vmatpush3.bf16.msra.mxu1 %v288_v12 }
  0x11   :  { %269 = vmatprep.subr.bf16.mxu1 %v299_v0 }
  0x14   :  { %270 = vmatpush3.bf16.msra.mxu1 %v289_v13 }
  0x15   :  { %271 = vmatprep.subr.bf16.mxu1 %v299_v0 }
  0x18   :  { %272 = vmatpush3.bf16.msra.mxu1 %v290_v14 }
  0x19   :  { %273 = vmatprep.subr.bf16.mxu1 %v299_v0 }
  0x1c   :  { %274 = vmatpush3.bf16.msra.mxu1 %v291_v15 }
  0x1d   :  { %275 = vmatprep.subr.bf16.mxu1 %v299_v0 }
  0x20   :  { %276 = vmatpush3.bf16.msra.mxu1 %v292_v16 }
  0xdb   :  { %v86_v18 = vpop.f32.mrb[0].mxu0 }
  0xdc   :  { %v87_v19 = vadd.f32 %v231_v17, %v86_v18  ;;  %v259_v20 = vpop.f32.mrb[1].mxu0 }
  0xdd   :  { %v89_v21 = vpop.f32.mrb[2].mxu0 }
  0xde   :  { %v90_v22 = vadd.f32 %v231_v17, %v89_v21  ;;  %v260_v23 = vpop.f32.mrb[3].mxu0  ;;  %293 = vtanh.f32 %v87_v19 }
  0xe0   :  { %295 = vtanh.f32 %v90_v22 }
  0xe8   :  { %v294_v24 = vpop.eup %293 }
  0xea   :  { %v296_v25 = vpop.eup %295 }
  0xeb   :  { %v95_v26 = vpack.c.bf16 %v296_v25, %v294_v24 }
  0xed   :  { %278 = vmatmul.mubr.bf16.vlgmr.msra.gmra.mrb[0].mxu1 %v95_v26 }
 0x1c0   :  { %v201_v28 = vpop.f32.mrb[0].mxu1 }
 0x1c1   :  { %v202_v29 = vadd.f32 %v234_v27, %v201_v28  ;;  %v279_v30 = vpop.f32.mrb[1].mxu1 }
 0x1c2   :  { %v204_v31 = vpop.f32.mrb[2].mxu1 }
 0x1c3   :  { %297 = vtanh.f32 %v202_v29  ;;  %v280_v32 = vpop.f32.mrb[3].mxu1 }
 0x1cd   :  { %v298_v34 = vpop.eup %297 }
 0x1ce   :  { %v225_v35 = vmul.f32 %v298_v34, %v243_v33 }
 0x1d0   :  { %226 = vst [vmem:[%s388_s6] sm:$0xff] %v225_v35 }

</bundles_post_ra>
